<compile_context>
chip_gen: v6e
topology: v6e:2x2x1
jax: 0.10.0
libtpu: 0.0.40
codegen_flags: <defaults>
</compile_context>

<pallas_src>
import jax
import jax.numpy as jnp
from jax.experimental import pallas as pl
from jax.experimental.pallas import tpu as pltpu


def vq_attention_kernel(img_ref, v_ref, out_ref):
    # img_ref: (TB, K, Di)  image features (bf16 stream, cast to f32 for compute)
    # v_ref:   (TB, Di)     Wi @ (qh * wa) per batch, f32
    # out_ref: (1, TB*K)    softmax over K, lane-dense store
    TB, K, Di = img_ref.shape

    img = img_ref[...].astype(jnp.float32)                 # bf16 -> f32 after load
    # logits[b, k] = sum_d img[b, k, d] * v[b, d]  (VPU multiply + lane reduce)
    logits = jnp.sum(img * v_ref[...][:, None, :], axis=-1)  # (TB, K)

    # Numerically safe softmax over K (the lane axis).  The per-batch bias
    # (bi . w_eff + ba) is constant over K and cancels here, so it was dropped.
    m = jnp.max(logits, axis=-1, keepdims=True)
    e = jnp.exp(logits - m)
    s = jnp.sum(e, axis=-1, keepdims=True)
    # NOTE: pl.reciprocal(s, approx=True) would move the divide to the EUP slot;
    # kept as an exact divide since the kernel is HBM-bound, not VPU-bound.
    out_ref[...] = (e / s).reshape(1, TB * K)              # lane-dense store


def vq_attention(image, question, wi, bi, wq, bq, wa, ba, *,
                 block_b=None, stream_dtype=jnp.bfloat16):
    """VQAttention forward (eval). Weights are [in, out] with weight_norm pre-folded.

    image: (B, K, Di), question: (B, Dq) -> (B, K, 1) softmax over K
    (matching PyTorch Softmax(dim=1) on the [B, K, 1] logits).
    """
    B, K, Di = image.shape

    # Hoisted question-side work (tiny: O(B*Dq*H) + O(B*Di*H)), with wa folded in,
    # and the image projection folded into a per-batch Di-vector:
    #   sum_h (img@Wi + bi) * (qh*wa) + ba  ==  img @ (Wi @ (qh*wa))  + const_over_K
    # The const-over-K term cancels in the softmax over K and is dropped exactly.
    # TODO(synk): nn.Dropout in training mode (random mask on ih*qh) is not
    # implemented; inference-mode dropout is the identity.
    qh = question @ wq + bq                 # (B, H)
    w_eff = qh * wa[:, 0]                   # (B, H)
    v = (w_eff @ wi.T).astype(jnp.float32)  # (B, Di)

    img = image.astype(stream_dtype)        # halve the dominant HBM stream
    itemsize = jnp.dtype(stream_dtype).itemsize

    if block_b is None:
        # Size the image tile to ~1 MiB per grid step (double-buffered this stays
        # far below the default scoped VMEM on v5e/v6e/v7x), not a 32 KiB sliver.
        target_bytes = 1 << 20
        tb = max(1, target_bytes // (K * Di * itemsize))
        if tb >= B:
            block_b = B
        else:
            block_b = max(8, (tb // 8) * 8)          # sublane-aligned
            while (block_b * K) % 128 != 0:          # keep output block lane-dense
                block_b *= 2

    # Pad batch to a multiple of block_b (handles ragged B; pad rows give a
    # harmless uniform softmax and are sliced off below).
    num_blocks = -(-B // block_b)
    B_pad = num_blocks * block_b
    if B_pad != B:
        img = jnp.pad(img, ((0, B_pad - B), (0, 0), (0, 0)))
        v = jnp.pad(v, ((0, B_pad - B), (0, 0)))

    out = pl.pallas_call(
        vq_attention_kernel,
        out_shape=jax.ShapeDtypeStruct((1, B_pad * K), jnp.float32),
        grid=(num_blocks,),
        in_specs=[
            pl.BlockSpec((block_b, K, Di), lambda b: (b, 0, 0)),  # image block
            pl.BlockSpec((block_b, Di), lambda b: (b, 0)),        # folded weights
        ],
        # Single lane-dense output row; reshaped to (B, K, 1) below.
        out_specs=pl.BlockSpec((1, block_b * K), lambda b: (0, b)),
        compiler_params=pltpu.CompilerParams(
            dimension_semantics=("parallel",)),  # batch-block axis -> 2 TCs on v7x
    )(img, v)

    return out.reshape(B_pad, K)[:B, :, None]


def weight_norm_effective(v, g):
    # weight_norm with dim=None: W = g * v / ||v||_F  (g is a scalar)
    return v * (g / jnp.linalg.norm(v))


if __name__ == "__main__":
    # Small shapes consistent with the module: image [B, K, image_dim], question [B, question_dim].
    B, K = 2, 16
    image_dim, question_dim, hidden_dim = 32, 16, 32

    key = jax.random.PRNGKey(0)
    ks = jax.random.split(key, 10)

    image = jax.random.normal(ks[0], (B, K, image_dim), jnp.float32)
    question = jax.random.normal(ks[1], (B, question_dim), jnp.float32)

    # Deterministic parameter init (PyTorch weight_norm init: g = ||v||_F).
    vi = jax.random.normal(ks[2], (hidden_dim, image_dim), jnp.float32) * 0.1
    gi = jnp.linalg.norm(vi)
    bi = jax.random.normal(ks[3], (hidden_dim,), jnp.float32) * 0.1

    vq = jax.random.normal(ks[4], (hidden_dim, question_dim), jnp.float32) * 0.1
    gq = jnp.linalg.norm(vq)
    bq = jax.random.normal(ks[5], (hidden_dim,), jnp.float32) * 0.1

    va = jax.random.normal(ks[6], (1, hidden_dim), jnp.float32) * 0.1
    ga = jnp.linalg.norm(va)
    ba = jax.random.normal(ks[7], (1,), jnp.float32) * 0.1

    # Fold weight-norm and transpose to [in, out] for the kernel.
    Wi = weight_norm_effective(vi, gi).T   # (image_dim, hidden)
    Wq = weight_norm_effective(vq, gq).T   # (question_dim, hidden)
    Wa = weight_norm_effective(va, ga).T   # (hidden, 1)

    out = vq_attention(image, question, Wi, bi, Wq, bq, Wa, ba)
    out = jax.block_until_ready(out)

    # Pure-JAX reference 1: exact module semantics, all f32 (eval mode).
    ih_ref = image @ Wi + bi                                            # [B, K, H]
    qh_ref = (question @ Wq + bq)[:, None, :]                           # [B, 1, H]
    logits_ref = jnp.sum((ih_ref * qh_ref) * Wa[:, 0], axis=-1) + ba[0]  # [B, K]
    ref_f32 = jax.nn.softmax(logits_ref, axis=-1)[..., None]            # [B, K, 1]

    # Pure-JAX reference 2: same folded math / bf16 image stream as the kernel.
    w_eff = (question @ Wq + bq) * Wa[:, 0]
    v_fold = w_eff @ Wi.T
    img_bf = image.astype(jnp.bfloat16).astype(jnp.float32)
    logits_bf = jnp.sum(img_bf * v_fold[:, None, :], axis=-1)
    ref_bf = jax.nn.softmax(logits_bf, axis=-1)[..., None]

    assert out.shape == (B, K, 1)
    assert jnp.allclose(jnp.sum(out[..., 0], axis=-1), 1.0, atol=1e-5)
    assert jnp.allclose(out, ref_bf, atol=1e-4, rtol=1e-4), \
        float(jnp.max(jnp.abs(out - ref_bf)))
    assert jnp.allclose(out, ref_f32, atol=3e-3, rtol=3e-3), \
        float(jnp.max(jnp.abs(out - ref_f32)))

    print("KERNEL_OK")
</pallas_src>

<mosaic_0001>
module attributes {stable_mosaic.version = 11 : i64} {
  func.func @vq_attention_kernel(%arg0: i32, %arg1: memref<2x16x32xbf16, #tpu.memory_space<vmem>>, %arg2: memref<2x32xf32, #tpu.memory_space<vmem>>, %arg3: memref<1x32xf32, #tpu.memory_space<vmem>>) attributes {dimension_semantics = [#tpu.dimension_semantics<parallel>], iteration_bounds = array<i64: 1>, scalar_prefetch = 0 : i64, scratch_operands = 0 : i64, tpu.core_type = #tpu.core_type<tc>, window_params = [{transform_indices = @transform_0, window_bounds = array<i64: 2, 16, 32>}, {transform_indices = @transform_1, window_bounds = array<i64: 2, 32>}, {transform_indices = @transform_2, window_bounds = array<i64: 1, 32>}]} {
    %c0 = arith.constant 0 : index
    %c0_0 = arith.constant 0 : index
    %c0_1 = arith.constant 0 : index
    %0 = vector.load %arg1[%c0, %c0_0, %c0_1] : memref<2x16x32xbf16, #tpu.memory_space<vmem>>, vector<2x16x32xbf16>
    %1 = arith.extf %0 : vector<2x16x32xbf16> to vector<2x16x32xf32>
    %c0_2 = arith.constant 0 : index
    %c0_3 = arith.constant 0 : index
    %2 = vector.load %arg2[%c0_2, %c0_3] : memref<2x32xf32, #tpu.memory_space<vmem>>, vector<2x32xf32>
    %3 = vector.shape_cast %2 : vector<2x32xf32> to vector<2x1x32xf32>
    %4 = vector.broadcast %3 : vector<2x1x32xf32> to vector<2x16x32xf32>
    %5 = arith.mulf %1, %4 : vector<2x16x32xf32>
    %cst = arith.constant dense<0.000000e+00> : vector<2x16xf32>
    %6 = vector.multi_reduction <add>, %5, %cst [2] : vector<2x16x32xf32> to vector<2x16xf32>
    %cst_4 = arith.constant dense<0xFF800000> : vector<2xf32>
    %7 = vector.multi_reduction <maximumf>, %6, %cst_4 [1] : vector<2x16xf32> to vector<2xf32>
    %8 = vector.shape_cast %7 : vector<2xf32> to vector<2x1xf32>
    %9 = vector.broadcast %8 : vector<2x1xf32> to vector<2x16xf32>
    %10 = arith.subf %6, %9 : vector<2x16xf32>
    %11 = math.exp %10 : vector<2x16xf32>
    %cst_5 = arith.constant dense<0.000000e+00> : vector<2xf32>
    %12 = vector.multi_reduction <add>, %11, %cst_5 [1] : vector<2x16xf32> to vector<2xf32>
    %13 = vector.shape_cast %12 : vector<2xf32> to vector<2x1xf32>
    %14 = vector.broadcast %13 : vector<2x1xf32> to vector<2x16xf32>
    %15 = arith.divf %11, %14 : vector<2x16xf32>
    %16 = vector.shape_cast %15 : vector<2x16xf32> to vector<1x32xf32>
    %c0_6 = arith.constant 0 : index
    %c0_7 = arith.constant 0 : index
    %17 = vector.load %arg3[%c0_6, %c0_7] : memref<1x32xf32, #tpu.memory_space<vmem>>, vector<1x32xf32>
    tpu.vector_store %arg3[%c0_6, %c0_7], %16 {strides = array<i32>} : memref<1x32xf32, #tpu.memory_space<vmem>>, vector<1x32xf32>,
    return
  }
  func.func @transform_0(%arg0: i32) -> (i32, i32, i32) {
    %c0_i32 = arith.constant 0 : i32
    %c0_i32_0 = arith.constant 0 : i32
    %c0_i32_1 = arith.constant 0 : i32
    return %arg0, %c0_i32, %c0_i32_0 : i32, i32, i32
  }
  func.func @transform_1(%arg0: i32) -> (i32, i32) {
    %c0_i32 = arith.constant 0 : i32
    %c0_i32_0 = arith.constant 0 : i32
    return %arg0, %c0_i32 : i32, i32
  }
  func.func @transform_2(%arg0: i32) -> (i32, i32) {
    %c0_i32 = arith.constant 0 : i32
    %c0_i32_0 = arith.constant 0 : i32
    return %c0_i32, %arg0 : i32, i32
  }
}

</mosaic_0001>

<bundles_post_ra>
// kernel: tpu_custom_call.1
= control target key start
LH: loop header
LB: loop body
LE: loop exit
PB: predicated region body
PF: predicated region fallthrough
CT: control target
= control target key end

     0   :  { %7 = vsyncpa [#allocation3], 0  ;;  %s439_s0 = inlined_call_operand.hbm [shape: bf16[2,16,32], index: 0, kind: input, shape index: {}]   ;;  %s440_s1 = inlined_call_operand.hbm [shape: f32[2,32], index: 1, kind: input, shape index: {}]   ;;  %s441_s2 = inlined_call_operand.hbm [shape: f32[1,32], index: 2, kind: output, shape index: {}]  }
   0x1   :  { %8 = vsyncpa [#allocation6], 0 }
   0x2   :  { %9 = vsyncpa [#allocation4], 0  ;;  %s364_s9 = smov [#allocation2]  }
   0x3   :  { %s15_s10 = sshll.u32 %s364_s9, 4  ;;  %s16_s10 = int_to_ptr.vmem [resolvable:$true] %s15_s10 }
   0x4   :  { %s306_s11 = scalar_lea.vmem %s16_s10, 256  ;;  %p311_p1 = scmp.lt.s32.totalorder %s16_s10, %s16_s10 }
   0x5   :  { %p307_p0 = scmp.ne.s32.totalorder %s16_s10, %s306_s11  ;;  %p312_p2 = scmp.lt.s32.totalorder %s306_s11, %s306_s11 }
   0x7   :  { %p313_p3 = por %p312_p2, %p311_p1 }
   0x9   :  { %p314_p4 = pnand %p313_p3, %p307_p0 }
   0xb   :  { %317 = shalt.err (!%p314_p4)
}
   0xc   :  { %s365_s12 = smov 64   ;;  %s366_s13 = smov 4  }
   0xd   :  { %21 = dma.hbm_to_vmem [thread:$0]  %s439_s0, 256, %s16_s10, [#allocation3], %s365_s12, %s365_s12, %s366_s13  }
   0xe   :  { %s367_s16 = smov [#allocation5]  }
   0xf   :  { %s28_s17 = sshll.u32 %s367_s16, 4  ;;  %s29_s17 = int_to_ptr.vmem [resolvable:$true] %s28_s17 }
  0x10   :  { %s326_s18 = scalar_lea.vmem %s29_s17, 32  ;;  %p331_p6 = scmp.lt.s32.totalorder %s29_s17, %s29_s17 }
  0x11   :  { %p327_p5 = scmp.ne.s32.totalorder %s29_s17, %s326_s18  ;;  %p332_p7 = scmp.lt.s32.totalorder %s326_s18, %s326_s18 }
  0x13   :  { %p333_p8 = por %p332_p7, %p331_p6 }
  0x15   :  { %p334_p9 = pnand %p333_p8, %p327_p5 }
  0x17   :  { %337 = shalt.err (!%p334_p9)
}
  0x18   :  { %31 = dma.hbm_to_vmem [thread:$0]  %s440_s1, 32, %s29_s17, [#allocation6]  }
  0x19   :  { %358 = dma.done.wait [#allocation3], 256  }
  0x1a   :  { %359 = vsyncadd [#allocation3], 4294967040 }
  0x1b   :  { %360 = dma.done.wait [#allocation6], 32  }
  0x1c   :  { %361 = vsyncadd [#allocation6], 4294967264  ;;  %v59_v0 = vlaneseq  ;;  %v368_v1 = vmov 1966171168   ;;  %v269_v7 = vld [vmem:[#allocation2] sm:$0xff]   ;;  %v276_v9 = vld [vmem:[#allocation2 + $0x8] sm:$0xff]  }
  0x1d   :  { %v57_v2 = vunpack.c.l.s4 %v368_v1  ;;  %v267_v8 = vld.sshfl [vmem:[#allocation5] sm:$0x11 pattern:$0x75316420]  ;;  %v270_v10 = vunpack.c.l.bf16 %v269_v7  ;;  %v271_v13 = vunpack.c.h.bf16 %v269_v7  ;;  %v274_v15 = vunpack.c.l.bf16 %v276_v9  ;;  %s370_s0 = smov [#allocation7]  }
  0x1e   :  { %v392_v3 = vshrl.u32 %v59_v0, 7  ;;  %v55_v12 = vcombine.high %v267_v8, %v267_v8  ;;  %v275_v17 = vunpack.c.h.bf16 %v276_v9  ;;  %vm84_vm0 = vcmask 261120   ;;  %s257_s1 = sshll.u32 %s370_s0, 4  ;;  %s258_s1 = int_to_ptr.vmem [resolvable:$true] %s257_s1 }
  0x1f   :  { %v58_v4 = vunpack.c.0.s8 %v57_v2  ;;  %v400_v27 = vand.u32 127, %v59_v0  ;;  %vm112_vm1 = vcmask 130112   ;;  %vm123_vm2 = vcmask 1041409   ;;  %s338_s21 = scalar_lea.vmem %s258_s1, 16  ;;  %s342_s22 = scalar_lea.vmem %s258_s1, 32 }
  0x20   :  { %v396_v6 = vsub.s32 0, %v392_v3  ;;  %vm126_vm3 = vcmask 123904   ;;  %v369_v43 = vmov 0   ;;  %v137_v44 = vsub.s32 1, %v392_v3  ;;  %p339_p10 = scmp.ne.s32.totalorder %s258_s1, %s338_s21  ;;  %p343_p11 = scmp.lt.s32.totalorder %s258_s1, %s258_s1 }
  0x21   :  { %v61_v5 = vsub.s32 %v58_v4, %v392_v3  ;;  %v107_v28 = vadd.s32 4294967288, %v400_v27  ;;  %v408_v32 = vsub.s32 %v400_v27, %v392_v3  ;;  %285 = vset.pattern.permute.xlu0 %v369_v43  ;;  %284 = vset.pattern.permute.xlu1 %v369_v43  ;;  %vm239_vm4 = vcmask 195712   ;;  %p344_p12 = scmp.lt.s32.totalorder %s342_s22, %s338_s21 }
  0x22   :  { %vm246_vm5 = vcmask 261312   ;;  %vm249_vm6 = vcmask 253952  }
  0x23   :  { %v62_v11 = vrot.slane %v267_v8, %v61_v5  ;;  %v69_v16 = vrot.slane %v55_v12, %v61_v5  ;;  %v404_v30 = vsub.s32 %v107_v28, %v392_v3  ;;  %p345_p13 = por %p344_p12, %p343_p11 }
  0x25   :  { %v73_v14 = vrot.slane %v62_v11, %v396_v6  ;;  %v77_v19 = vrot.slane %v69_v16, %v396_v6  ;;  %p346_p0 = pnand %p345_p13, %p339_p10 }
  0x27   :  { %v80_v18 = vmul.f32 %v270_v10, %v73_v14  ;;  %v81_v20 = vmul.f32 %v271_v13, %v73_v14  ;;  %v82_v22 = vmul.f32 %v274_v15, %v77_v19  ;;  %v83_v23 = vmul.f32 %v275_v17, %v77_v19 }
  0x29   :  { %v85_v21 = vsel %vm84_vm0, %v80_v18, 0.0  ;;  %v91_v24 = vsel %vm84_vm0, %v82_v22, 0.0  ;;  %v88_v25 = vsel %vm84_vm0, %v81_v20, 0.0  ;;  %v94_v26 = vsel %vm84_vm0, %v83_v23, 0.0 }
  0x2a   :  { %86 = vadd.xlane.f32.xlu0 %v85_v21  ;;  %92 = vadd.xlane.f32.xlu1 %v91_v24  ;;  %v234_v20 = vadd.s32 4294967280, %v400_v27  ;;  %v241_v22 = vadd.s32 4294967272, %v400_v27 }
  0x2e   :  { %89 = vadd.xlane.f32.xlu0 %v88_v25  ;;  %95 = vadd.xlane.f32.xlu1 %v94_v26  ;;  %v244_v25 = vsub.s32 %v241_v22, %v392_v3 }
  0xb3   :  { %v87_v29 = vpop.xlane.xlu0 %86  ;;  %v93_v31 = vpop.xlane.xlu1 %92 }
  0xb4   :  { %v106_v36 = vrot.slane %v87_v29, %v408_v32  ;;  %v117_v37 = vrot.slane %v93_v31, %v408_v32 }
  0xb7   :  { %v90_v33 = vpop.xlane.xlu0 %89  ;;  %v96_v35 = vpop.xlane.xlu1 %95 }
  0xb8   :  { %v111_v34 = vrot.slane %v90_v33, %v404_v30  ;;  %v121_v38 = vrot.slane %v96_v35, %v404_v30 }
  0xba   :  { %v113_v39 = vsel %vm112_vm1, %v111_v34, %v106_v36  ;;  %v122_v40 = vsel %vm112_vm1, %v121_v38, %v117_v37 }
  0xbb   :  { %v124_v41 = vsel %vm123_vm2, %v122_v40, %v113_v39 }
  0xbc   :  { %v127_v42 = vsel %vm126_vm3, %v124_v41, -inf }
  0xbd   :  { %128 = vmax.xlane.f32.xlu0 %v127_v42 }
 0x146   :  { %v129_v45 = vpop.xlane.xlu0 %128 }
 0x147   :  { %v134_v46 = vrot.slane %v129_v45, %v396_v6  ;;  %v138_v47 = vrot.slane %v129_v45, %v137_v44 }
 0x149   :  { %v141_v48 = vsub.f32 %v87_v29, %v134_v46  ;;  %v142_v49 = vsub.f32 %v90_v33, %v134_v46  ;;  %v143_v50 = vsub.f32 %v93_v31, %v138_v47  ;;  %v144_v53 = vsub.f32 %v96_v35, %v138_v47 }
 0x14b   :  { %v145_v51 = vmul.f32 1.442695, %v141_v48  ;;  %v147_v52 = vmul.f32 1.442695, %v142_v49  ;;  %v149_v54 = vmul.f32 1.442695, %v143_v50 }
 0x14c   :  { %v151_v55 = vmul.f32 1.442695, %v144_v53 }
 0x14d   :  { %286 = vpow2.f32 %v145_v51 }
 0x14e   :  { %288 = vpow2.f32 %v147_v52 }
 0x14f   :  { %290 = vpow2.f32 %v149_v54 }
 0x150   :  { %292 = vpow2.f32 %v151_v55 }
 0x15a   :  { %v287_v56 = vpop.eup %286 }
 0x15b   :  { %v289_v57 = vpop.eup %288  ;;  %158 = vperm.xlu1 %284, %v287_v56  }
 0x15c   :  { %161 = vperm.xlu0 %285, %v289_v57   ;;  %v291_v58 = vpop.eup %290 }
 0x15d   :  { %v293_v59 = vpop.eup %292 }
 0x15f   :  { %164 = vperm.xlu1 %284, %v291_v58  }
 0x163   :  { %167 = vperm.xlu1 %284, %v293_v59  }
 0x1d6   :  { %v159_v60 = vpop.permute.xlu1 %158 }
 0x1d7   :  { %v162_v61 = vpop.permute.xlu0 %161  ;;  %v172_v0 = vrot.slane %v159_v60, %v408_v32 }
 0x1d8   :  { %v176_v63 = vrot.slane %v162_v61, %v404_v30 }
 0x1da   :  { %v165_v62 = vpop.permute.xlu1 %164  ;;  %v177_v5 = vsel %vm112_vm1, %v176_v63, %v172_v0 }
 0x1db   :  { %v181_v2 = vrot.slane %v165_v62, %v408_v32 }
 0x1de   :  { %v168_v1 = vpop.permute.xlu1 %167 }
 0x1df   :  { %v185_v4 = vrot.slane %v168_v1, %v404_v30 }
 0x1e1   :  { %v186_v7 = vsel %vm112_vm1, %v185_v4, %v181_v2 }
 0x1e2   :  { %v187_v8 = vsel %vm123_vm2, %v186_v7, %v177_v5 }
 0x1e3   :  { %v189_v9 = vsel %vm126_vm3, %v187_v8, 0.0 }
 0x1e4   :  { %190 = vadd.xlane.f32.xlu1 %v189_v9 }
 0x26d   :  { %v191_v10 = vpop.xlane.xlu1 %190 }
 0x26e   :  { %v196_v11 = vrot.slane %v191_v10, %v396_v6  ;;  %v200_v12 = vrot.slane %v191_v10, %v137_v44  ;;  %v237_v6 = vsub.s32 %v234_v20, %v392_v3 }
 0x270   :  { %294 = vrcp.f32 %v196_v11 }
 0x271   :  { %296 = vrcp.f32 %v200_v12 }
 0x27d   :  { %v295_v13 = vpop.eup %294 }
 0x27e   :  { %v204_v14 = vmul.f32 %v295_v13, %v287_v56  ;;  %v205_v15 = vmul.f32 %v295_v13, %v289_v57  ;;  %v297_v16 = vpop.eup %296 }
 0x27f   :  { %v207_v17 = vmul.f32 %v297_v16, %v291_v58  ;;  %v208_v18 = vmul.f32 %v297_v16, %v293_v59 }
 0x280   :  { %214 = vperm.xlu0 %285, %v204_v14  }
 0x284   :  { %217 = vperm.xlu0 %285, %v205_v15  }
 0x288   :  { %220 = vperm.xlu0 %285, %v207_v17  }
 0x28c   :  { %223 = vperm.xlu0 %285, %v208_v18  }
 0x2fb   :  { %v215_v19 = vpop.permute.xlu0 %214 }
 0x2fc   :  { %v228_v28 = vrot.slane %v215_v19, %v408_v32 }
 0x2ff   :  { %v218_v21 = vpop.permute.xlu0 %217 }
 0x300   :  { %v232_v24 = vrot.slane %v218_v21, %v404_v30 }
 0x302   :  { %v233_v31 = vsel %vm112_vm1, %v232_v24, %v228_v28 }
 0x303   :  { %v221_v23 = vpop.permute.xlu0 %220 }
 0x304   :  { %v238_v26 = vrot.slane %v221_v23, %v237_v6 }
 0x306   :  { %v240_v27 = vsel %vm239_vm4, %v238_v26, %v233_v31 }
 0x307   :  { %v224_v29 = vpop.permute.xlu0 %223 }
 0x308   :  { %v245_v33 = vrot.slane %v224_v29, %v244_v25 }
 0x30a   :  { %v247_v34 = vsel %vm246_vm5, %v245_v33, %v240_v27 }
 0x30b   :  { %250 = vst.msk [vmem:[#allocation7] sm:$0x1] %vm249_vm6, %v247_v34 }
 0x30c   :  { %349 = shalt.err (!%p346_p0)
}
 0x30d   :  { %260 = dma.vmem_to_hbm [thread:$0]  %s258_s1, 16, %s441_s2, [#allocation4]  }
 0x30e   :  { %362 = dma.done.wait [#allocation4], 16  }
 0x30f   :  { %363 = vsyncadd [#allocation4], 4294967280 }
 0x310   :  { %264 = vsyncpa [#allocation3], 1 }
 0x311   :  { %265 = vsyncpa [#allocation6], 1 }
 0x312   :  { %266 = vsyncpa [#allocation4], 1 }

</bundles_post_ra>
